<compile_context>
chip_gen: v5e
topology: v5e:2x2
jax: 0.10.0
libtpu: 0.0.40
codegen_flags: <defaults>
</compile_context>

<pallas_src>
import functools

import jax
import jax.numpy as jnp
from jax.experimental import pallas as pl
from jax.experimental.pallas import tpu as pltpu


# ----------------------------------------------------------------------------
# Kernel
# ----------------------------------------------------------------------------
def _value_model_kernel(x_ref, p_ref, out_ref, *, s):
    # x_ref:   (s, TILE_B)      batch on lanes
    # p_ref:   (h+1, s+2)       cols [0:s]=W1^T, col s=b1 (+1.0 const unit),
    #                           col s+1=fused head W2@W3 (+b23 on const unit)
    # out_ref: (1, TILE_B)      lane-dense value slab
    x = x_ref[...]
    p = p_ref[...]
    w1t = p[:, 0:s]                       # (h+1, s)   static lane slice
    b1 = p[:, s:s + 1]                    # (h+1, 1)
    head = p[:, s + 1:s + 2]              # (h+1, 1)   fused fc2@fc3 (+b23)

    # fc1 on the MXU in the (h, s) @ (s, TILE_B) orientation; bias add + ReLU
    # on the VPU (free slack next to the ReLU).
    hid = jnp.maximum(
        jnp.dot(w1t, x, preferred_element_type=jnp.float32) + b1, 0.0
    )                                     # (h+1, TILE_B); row h is constant 1

    # Fused fc2+fc3 head: broadcast multiply (VPU) + sublane reduce (XLU).
    # b23 rides along via the constant hidden unit.
    out_ref[...] = jnp.sum(head * hid, axis=0, keepdims=True)


# ----------------------------------------------------------------------------
# Parameter packing (done once, outside the kernel)
# ----------------------------------------------------------------------------
def pack_params(params, *, s=4, h=16):
    """Pack (W1,b1,W2,b2,W3,b3) into a single (h+1, s+2) f32 buffer.

    Layout (rows = hidden units, plus one constant unit; cols = [W1^T | b1 | head]):
      rows 0..h-1, cols 0..s-1 : W1^T                       (h, s)
      rows 0..h-1, col  s      : b1                         (h,)
      rows 0..h-1, col  s+1    : W23 = W2 @ W3              (h,)
      row  h,      col  s      : 1.0   (constant hidden unit, ReLU(1)=1)
      row  h,      col  s+1    : b23 = b2 @ W3 + b3         scalar
    """
    w1, b1, w2, b2, w3, b3 = params
    w23 = (w2 @ w3).reshape(-1)              # (h,)
    b23 = (b2 @ w3 + b3).reshape(())         # scalar

    packed = jnp.zeros((h + 1, s + 2), jnp.float32)
    packed = packed.at[:h, :s].set(w1.T)
    packed = packed.at[:h, s].set(b1.reshape(-1))
    packed = packed.at[:h, s + 1].set(w23)
    packed = packed.at[h, s].set(1.0)        # constant hidden unit
    packed = packed.at[h, s + 1].set(b23)    # fused fc3 bias
    return packed


# ----------------------------------------------------------------------------
# Wrappers
# ----------------------------------------------------------------------------
_MAX_TILE_B = 8192   # states per grid step (lane-dense); big blocks amortize
                     # the ~0.35 us per-step overhead, still tiny in VMEM.


@jax.jit
def value_model_forward_batched(states, packed_params):
    """states: (B, s) f32. Returns (B, 1) values."""
    B, s = states.shape
    h1, _ = packed_params.shape

    tile_b = min(_MAX_TILE_B, ((B + 127) // 128) * 128)
    n_blocks = pl.cdiv(B, tile_b)
    Bp = n_blocks * tile_b

    # Layout plumbing only: put the batch on the lane axis and pad to a whole
    # number of lane-dense blocks.  No bias column, no per-row init.
    xt = states.astype(jnp.float32).T                 # (s, B)
    xt = jnp.pad(xt, ((0, 0), (0, Bp - B)))           # (s, Bp)

    out = pl.pallas_call(
        functools.partial(_value_model_kernel, s=s),
        out_shape=jax.ShapeDtypeStruct((1, Bp), jnp.float32),
        grid=(n_blocks,),
        in_specs=[
            pl.BlockSpec((s, tile_b), lambda i: (0, i)),        # batch blocks
            pl.BlockSpec((h1, s + 2), lambda i: (0, 0)),        # params resident
        ],
        out_specs=pl.BlockSpec((1, tile_b), lambda i: (0, i)),  # lane-dense out
        compiler_params=pltpu.CompilerParams(
            dimension_semantics=("parallel",)),                 # megacore on v7x
    )(xt, packed_params)

    return out[0, :B].reshape(B, 1)


def value_model_forward(state, packed_params):
    """Matches ValueModel.forward: state (s,) -> (1, 1) value (torch unsqueeze)."""
    # TODO(synk): torch.from_numpy host conversion has no kernel equivalent;
    # handled here in the JAX wrapper.
    x = jnp.asarray(state, jnp.float32).reshape(1, -1)
    return value_model_forward_batched(x, packed_params)


# ----------------------------------------------------------------------------
# Init + pure-JAX reference (unfused, mirrors the PyTorch module)
# ----------------------------------------------------------------------------
def init_params(key, s=4, h=16, a=2):
    """nn.Linear-style init U(-1/sqrt(fan_in), 1/sqrt(fan_in)).
    Weights stored as (in, out); biases as (1, out)."""
    def linear(key, fan_in, fan_out):
        kw, kb = jax.random.split(key)
        bound = 1.0 / jnp.sqrt(jnp.asarray(fan_in, jnp.float32))
        w = jax.random.uniform(kw, (fan_in, fan_out), jnp.float32, -bound, bound)
        b = jax.random.uniform(kb, (1, fan_out), jnp.float32, -bound, bound)
        return w, b

    k1, k2, k3 = jax.random.split(key, 3)
    w1, b1 = linear(k1, s, h)
    w2, b2 = linear(k2, h, a)
    w3, b3 = linear(k3, a, 1)
    return (w1, b1, w2, b2, w3, b3)


def reference_forward(states, params):
    w1, b1, w2, b2, w3, b3 = params
    x = jnp.asarray(states, jnp.float32)
    if x.ndim == 1:
        x = x.reshape(1, -1)
    x = jnp.maximum(x @ w1 + b1, 0.0)
    x = x @ w2 + b2
    return x @ w3 + b3


# ----------------------------------------------------------------------------
if __name__ == "__main__":
    s, h, a = 4, 16, 2
    key = jax.random.PRNGKey(0)
    pkey, skey, bkey, rkey = jax.random.split(key, 4)

    params = init_params(pkey, s=s, h=h, a=a)
    packed = pack_params(params, s=s, h=h)   # single (h+1, s+2) buffer

    # Single-state path (matches the PyTorch forward semantics exactly).
    state = jax.random.normal(skey, (s,), dtype=jnp.float32)  # CartPole-like obs
    value = value_model_forward(state, packed)
    jax.block_until_ready(value)
    ref = reference_forward(state, params)
    assert value.shape == (1, 1)
    assert jnp.allclose(value, ref, atol=1e-5, rtol=1e-5)

    # Small batched path.
    B = 8
    states = jax.random.normal(bkey, (B, s), dtype=jnp.float32)
    values = value_model_forward_batched(states, packed)
    jax.block_until_ready(values)
    refs = reference_forward(states, params)
    assert values.shape == (B, 1)
    assert jnp.allclose(values, refs, atol=1e-5, rtol=1e-5)

    # Rollout-sized batch: exercises the multi-step batch grid + pipelining.
    B_big = 20000
    states_big = jax.random.normal(rkey, (B_big, s), dtype=jnp.float32)
    values_big = value_model_forward_batched(states_big, packed)
    jax.block_until_ready(values_big)
    refs_big = reference_forward(states_big, params)
    assert values_big.shape == (B_big, 1)
    assert jnp.allclose(values_big, refs_big, atol=1e-5, rtol=1e-5)

    print("KERNEL_OK")
</pallas_src>

<mosaic_0001>
module attributes {stable_mosaic.version = 11 : i64} {
  func.func @_value_model_kernel(%arg0: i32, %arg1: memref<4x128xf32, #tpu.memory_space<vmem>>, %arg2: memref<17x6xf32, #tpu.memory_space<vmem>>, %arg3: memref<1x128xf32, #tpu.memory_space<vmem>>) attributes {dimension_semantics = [#tpu.dimension_semantics<parallel>], iteration_bounds = array<i64: 1>, scalar_prefetch = 0 : i64, scratch_operands = 0 : i64, tpu.core_type = #tpu.core_type<tc>, window_params = [{transform_indices = @transform_0, window_bounds = array<i64: 4, 128>}, {pipeline_mode = #tpu.pipeline_mode<synchronous>, transform_indices = @transform_1, window_bounds = array<i64: 17, 6>}, {transform_indices = @transform_2, window_bounds = array<i64: 1, 128>}]} {
    %c0 = arith.constant 0 : index
    %c0_0 = arith.constant 0 : index
    %0 = vector.load %arg1[%c0, %c0_0] : memref<4x128xf32, #tpu.memory_space<vmem>>, vector<4x128xf32>
    %c0_1 = arith.constant 0 : index
    %c0_2 = arith.constant 0 : index
    %1 = vector.load %arg2[%c0_1, %c0_2] : memref<17x6xf32, #tpu.memory_space<vmem>>, vector<17x6xf32>
    %2 = vector.extract_strided_slice %1 {offsets = [0, 0], sizes = [17, 4], strides = [1, 1]} : vector<17x6xf32> to vector<17x4xf32>
    %3 = vector.extract_strided_slice %1 {offsets = [0, 4], sizes = [17, 1], strides = [1, 1]} : vector<17x6xf32> to vector<17x1xf32>
    %4 = vector.extract_strided_slice %1 {offsets = [0, 5], sizes = [17, 1], strides = [1, 1]} : vector<17x6xf32> to vector<17x1xf32>
    %cst = arith.constant dense<0.000000e+00> : vector<17x128xf32>
    %5 = tpu.matmul %2, %0, %cst {dimension_numbers = #tpu.dot_dimension_numbers<[1], [0], [0], [1], [0, 0, 1, 1], [], []>} : vector<17x4xf32>, vector<4x128xf32>, vector<17x128xf32> -> vector<17x128xf32>
    %6 = vector.broadcast %3 : vector<17x1xf32> to vector<17x128xf32>
    %7 = arith.addf %5, %6 : vector<17x128xf32>
    %cst_3 = arith.constant 0.000000e+00 : f32
    %8 = vector.broadcast %cst_3 : f32 to vector<17x128xf32>
    %9 = arith.maximumf %7, %8 : vector<17x128xf32>
    %10 = vector.broadcast %4 : vector<17x1xf32> to vector<17x128xf32>
    %11 = arith.mulf %10, %9 : vector<17x128xf32>
    %cst_4 = arith.constant dense<0.000000e+00> : vector<128xf32>
    %12 = vector.multi_reduction <add>, %11, %cst_4 [0] : vector<17x128xf32> to vector<128xf32>
    %13 = vector.shape_cast %12 : vector<128xf32> to vector<1x128xf32>
    %c0_5 = arith.constant 0 : index
    %c0_6 = arith.constant 0 : index
    %14 = vector.load %arg3[%c0_5, %c0_6] : memref<1x128xf32, #tpu.memory_space<vmem>>, vector<1x128xf32>
    tpu.vector_store %arg3[%c0_5, %c0_6], %13 {strides = array<i32>} : memref<1x128xf32, #tpu.memory_space<vmem>>, vector<1x128xf32>,
    return
  }
  func.func @transform_0(%arg0: i32) -> (i32, i32) {
    %c0_i32 = arith.constant 0 : i32
    %c0_i32_0 = arith.constant 0 : i32
    return %c0_i32, %arg0 : i32, i32
  }
  func.func @transform_1(%arg0: i32) -> (i32, i32) {
    %c0_i32 = arith.constant 0 : i32
    %c0_i32_0 = arith.constant 0 : i32
    %c0_i32_1 = arith.constant 0 : i32
    return %c0_i32, %c0_i32_0 : i32, i32
  }
  func.func @transform_2(%arg0: i32) -> (i32, i32) {
    %c0_i32 = arith.constant 0 : i32
    %c0_i32_0 = arith.constant 0 : i32
    return %c0_i32, %arg0 : i32, i32
  }
}

</mosaic_0001>

<bundles_post_ra>
// kernel: value_model_forward_batched.1
= control target key start
LH: loop header
LB: loop body
LE: loop exit
PB: predicated region body
PF: predicated region fallthrough
CT: control target
= control target key end

     0   :  { %vm38_vm0 = vcmask 1043456   ;;  %vm31_vm1 = vcmask 31744   ;;  %v153_v2 = vmov 4   ;;  %s186_s0 = inlined_call_operand.vmem [shape: f32[4,128], index: 0, kind: input, shape index: {}]   ;;  %s187_s1 = inlined_call_operand.vmem [shape: f32[17,6], index: 1, kind: input, shape index: {}]   ;;  %s188_s2 = inlined_call_operand.hbm [shape: f32[1,128], index: 2, kind: output, shape index: {}]  }
   0x1   :  { %v12_v0 = vld [vmem:[%s186_s0] sm:$0xf]  ;;  %122 = vset.pattern.permute.xlu0 %v153_v2  ;;  %v14_v3 = vld [vmem:[%s187_s1 + $0x8] sm:$0xff]  ;;  %v15_v4 = vld [vmem:[%s187_s1 + $0x10] sm:$0x1] }
   0x2   :  { %v13_v1 = vld [vmem:[%s187_s1] sm:$0xff]  ;;  %113 = vmatpush.msk.msra.mxu0 %vm38_vm0, %v12_v0 }
   0x3   :  { %7 = vsyncpa [#allocation3], 0  ;;  %117 = vmatpush.msk.msra.mxu1 %vm38_vm0, %v12_v0  ;;  %118 = vmatpush.msk.msra.mxu2 %vm38_vm0, %v12_v0  ;;  %v154_v5 = vmov 5   ;;  %vm87_vm2 = vcmask 1040384   ;;  %s155_s0 = smov [#allocation2]   ;;  %s104_s19 = sshll.u32 %s188_s2, 4  ;;  %s105_s19 = int_to_ptr.hbm [resolvable:$true] %s104_s19 }
   0x4   :  { %18 = vperm.xlu0 %122, %v13_v1   ;;  %114 = vmatmul.msk.f32.vlgmr.msra.gmra.mxu0 %vm31_vm1, %v13_v1  ;;  %s102_s1 = sshll.u32 %s155_s0, 4  ;;  %s103_s1 = int_to_ptr.vmem [resolvable:$true] %s102_s1 }
   0x5   :  { %115 = vmatmul.msk.f32.vlgmr.msra.gmra.mxu1 %vm31_vm1, %v14_v3  ;;  %116 = vmatmul.msk.f32.vlgmr.msra.gmra.mxu2 %vm31_vm1, %v15_v4 }
   0x6   :  { %123 = vset.pattern.permute.xlu1 %v153_v2  ;;  %125 = vset.pattern.permute.xlu2 %v154_v5 }
   0x7   :  { %28 = vperm.xlu1 %123, %v15_v4   ;;  %76 = vperm.xlu2 %125, %v14_v3  }
   0xc   :  { %23 = vperm.xlu0 %122, %v14_v3  }
   0xf   :  { %124 = vset.pattern.permute.xlu1 %v154_v5  ;;  %80 = vperm.xlu2 %125, %v15_v4  }
  0x10   :  { %72 = vperm.xlu1 %124, %v13_v1  }
  0x14   :  { %126 = vset.pattern.permute.xlu0 %v154_v5 }
  0x61   :  { %v77_v8 = vpop.permute.xlu2 %76 }
  0x69   :  { %v81_v22 = vpop.permute.xlu2 %80 }
  0x76   :  { %v19_v6 = vpop.permute.xlu0 %18 }
  0x79   :  { %v29_v7 = vpop.permute.xlu1 %28 }
  0x7e   :  { %v24_v10 = vpop.permute.xlu0 %23 }
  0x81   :  { %v59_v9 = vpop.f32.mrf.mxu0 }
  0x82   :  { %v60_v11 = vadd.f32 %v59_v9, %v19_v6  ;;  %v62_v12 = vpop.f32.mrf.mxu1  ;;  %v73_v16 = vpop.permute.xlu1 %72 }
  0x83   :  { %v63_v13 = vadd.f32 %v62_v12, %v24_v10 }
  0x84   :  { %v68_v14 = vmax.f32 %v60_v11, 0.0 }
  0x85   :  { %v69_v15 = vmax.f32 %v63_v13, 0.0 }
  0x86   :  { %v83_v20 = vmul.f32 %v73_v16, %v68_v14 }
  0x87   :  { %v84_v19 = vmul.f32 %v77_v8, %v69_v15 }
  0x88   :  { %v65_v17 = vpop.f32.mrf.mxu2 }
  0x89   :  { %v66_v18 = vadd.f32 %v65_v17, %v29_v7  ;;  %v86_v24 = vadd.f32 %v84_v19, %v83_v20 }
  0x8b   :  { %v70_v21 = vmax.f32 %v66_v18, 0.0 }
  0x8d   :  { %v85_v23 = vmul.f32 %v81_v22, %v70_v21 }
  0x8f   :  { %v88_v25 = vsel %vm87_vm2, %v85_v23, 0.0 }
  0x90   :  { %v89_v26 = vadd.f32 %v88_v25, %v86_v24 }
  0x92   :  { %v90_v27 = vrot.slane %v89_v26, 4 }
  0x94   :  { %v91_v28 = vadd.f32 %v90_v27, %v89_v26 }
  0x96   :  { %v92_v29 = vrot.slane %v91_v28, 2 }
  0x98   :  { %v93_v30 = vadd.f32 %v92_v29, %v91_v28 }
  0x9a   :  { %v94_v31 = vrot.slane %v93_v30, 1 }
  0x9c   :  { %v95_v32 = vadd.f32 %v94_v31, %v93_v30 }
  0x9e   :  { %96 = vst [vmem:[#allocation2] sm:$0x1] %v95_v32 }
  0x9f   :  { %107 = dma.vmem_to_hbm [thread:$0]  %s103_s1, 16, %s105_s19, [#allocation3]  }
  0xa0   :  { %151 = dma.done.wait [#allocation3], 16  }
  0xa1   :  { %152 = vsyncadd [#allocation3], 4294967280 }
  0xa2   :  { %112 = vsyncpa [#allocation3], 1 }

</bundles_post_ra>
